<compile_context>
chip_gen: v6e
topology: v6e:2x2x1
jax: 0.10.0
libtpu: 0.0.40
codegen_flags: <defaults>
</compile_context>

<pallas_src>
import functools

import jax
import jax.numpy as jnp
from jax import lax
from jax.experimental import pallas as pl
from jax.experimental.pallas import tpu as pltpu

LEAKY_SLOPE = 0.2
BN_EPS = 1e-5


def _round_up(v, m):
    return (v + m - 1) // m * m


# ---------------- Pallas kernels (hot path) ----------------

def _conv_stats_kernel(p_ref, w_ref, b_ref, o_ref, psum_ref, psq_ref, *,
                       mask_last, valid_cols):
    """Fused conv tile (channels-major) + bias + BN partial statistics.

    p_ref : (1, K_pad, THW)   bf16  im2col patch columns for this spatial tile
    w_ref : (Cout_p, K_pad)   bf16  full weight matrix (resident, fetched once)
    b_ref : (Cout_p, 1)       f32   bias column
    o_ref : (1, Cout_p, THW)  bf16  conv output tile (already NCHW-major)
    psum  : (1, Cout_p, 1)    f32   per-tile sum of (conv - bias)
    psq   : (1, Cout_p, 1)    f32   per-tile sum of (conv - bias)^2
    """
    # Single MXU matmul, f32 accumulation; weights stay resident in VMEM so
    # there is no K grid axis and no accumulator scratch.
    z = jnp.dot(w_ref[...], p_ref[0], preferred_element_type=jnp.float32)
    o_ref[0] = (z + b_ref[...]).astype(o_ref.dtype)

    # Bias-centred partial statistics from the f32 MXU result (lane reduction).
    psum_ref[0] = jnp.sum(z, axis=1, keepdims=True)
    psq_ref[0] = jnp.sum(z * z, axis=1, keepdims=True)

    if mask_last:
        # Only the last spatial tile of each image contains padded columns;
        # grid queries stay at the kernel top level (NOT inside pl.when).
        j = pl.program_id(1)
        last = pl.num_programs(1) - 1

        @pl.when(j == last)
        def _():
            col = lax.broadcasted_iota(jnp.int32, z.shape, 1)
            zm = jnp.where(col < valid_cols, z, 0.0)
            psum_ref[0] = jnp.sum(zm, axis=1, keepdims=True)
            psq_ref[0] = jnp.sum(zm * zm, axis=1, keepdims=True)


def _bn_act_kernel(x_ref, scale_ref, shift_ref, o_ref, *, batchnorm, activation):
    """Normalize (y*scale + shift) + LeakyReLU; all VPU math in f32 (v5e-safe)."""
    y = x_ref[0].astype(jnp.float32)              # bf16 -> f32 on load
    if batchnorm:
        y = y * scale_ref[...] + shift_ref[...]   # (Cout_p, THW) * (Cout_p, 1)
    if activation:
        y = jnp.where(y > 0, y, LEAKY_SLOPE * y)
    o_ref[0] = y


# ---------------- wrapper (glue: padding, im2col, tiling) ----------------

def downsample_conv(x, w, b, gamma, beta, *, kernel=4, stride=2, padding=1,
                    activation=True, batchnorm=True):
    N, Cin, H, W = x.shape
    Cout = w.shape[0]
    Kh = Kw = kernel

    # reflect padding (PyTorch padding_mode='reflect', edge excluded) + bf16 cast
    xp = jnp.pad(x.astype(jnp.bfloat16),
                 ((0, 0), (0, 0), (padding, padding), (padding, padding)),
                 mode="reflect")
    Hp, Wp = H + 2 * padding, W + 2 * padding
    Ho = (Hp - Kh) // stride + 1
    Wo = (Wp - Kw) // stride + 1
    HoWo = Ho * Wo
    K = Cin * Kh * Kw

    # K-major im2col (N, K, Ho*Wo). Column index = output pixel, so the conv
    # kernel's (Cout, columns) result is already NCHW-major and no trailing
    # transpose pass is needed. Feature index = cin*Kh*Kw + ki*Kw + kj, which
    # matches w.reshape(Cout, K).
    # TODO(synk): fold im2col into the conv kernel (manual double-buffered DMA
    # over the Kh*Kw offsets of the padded input) to avoid materializing this
    # ~(Kh*Kw/stride^2)x-input tensor in HBM.
    cols = []
    for ki in range(Kh):
        for kj in range(Kw):
            cols.append(xp[:, :,
                           ki: ki + (Ho - 1) * stride + 1: stride,
                           kj: kj + (Wo - 1) * stride + 1: stride])
    patches = jnp.stack(cols, axis=2).reshape(N, K, HoWo)        # bf16

    # lane/sublane friendly padded sizes
    Cout_p = _round_up(Cout, 128)
    K_pad = _round_up(K, 128)

    # spatial tile selection, VMEM-budget driven (v7x: 64 MiB physical VMEM).
    # Note: resident weights assume Cin,Cout <= ~512 (true for this module);
    # larger layers would need a K-tiled fallback.
    budget = 32 * 1024 * 1024
    w_bytes = 2 * Cout_p * K_pad * 2                  # resident weights (2 bufs)
    per_col = 2 * K_pad * 2 + 2 * Cout_p * 2          # patch col + out col, bf16, 2 bufs
    thw_cap = (budget - w_bytes) // per_col
    thw_cap = max(128, min(2048, thw_cap // 128 * 128))
    if HoWo <= thw_cap:
        hw_tiles, THW = 1, HoWo                       # full last dim -> always legal
    else:
        hw_tiles = pl.cdiv(HoWo, thw_cap)
        THW = _round_up(pl.cdiv(HoWo, hw_tiles), 128) # balanced tiles, min padding
        hw_tiles = pl.cdiv(HoWo, THW)
    # keep >=2 grid steps when possible so both v7x TensorCores get work
    if N * hw_tiles < 2 and HoWo >= 256:
        hw_tiles = 2
        THW = _round_up(pl.cdiv(HoWo, 2), 128)
    HoWo_pad = hw_tiles * THW
    mask_last = HoWo_pad != HoWo
    valid_cols = HoWo - (hw_tiles - 1) * THW

    patches = jnp.pad(patches, ((0, 0), (0, K_pad - K), (0, HoWo_pad - HoWo)))
    wmat = jnp.pad(w.reshape(Cout, K).astype(jnp.bfloat16),
                   ((0, Cout_p - Cout), (0, K_pad - K)))          # (Cout_p, K_pad)
    bias = jnp.pad(b.astype(jnp.float32).reshape(Cout, 1),
                   ((0, Cout_p - Cout), (0, 0)))                  # (Cout_p, 1)

    conv_vmem = (w_bytes + 2 * K_pad * THW * 2 + 2 * Cout_p * THW * 2
                 + 8 * Cout_p * 4 + (1 << 20))
    vmem_limit = int(min(max(conv_vmem * 5 // 4, 32 * 1024 * 1024),
                         48 * 1024 * 1024))

    # ---- fused conv (bf16 matmul, f32 accum) + bias + BN partial stats ----
    conv_t, psum, psq = pl.pallas_call(
        functools.partial(_conv_stats_kernel,
                          mask_last=mask_last, valid_cols=valid_cols),
        out_shape=(
            jax.ShapeDtypeStruct((N, Cout_p, HoWo_pad), jnp.bfloat16),
            jax.ShapeDtypeStruct((N * hw_tiles, Cout_p, 1), jnp.float32),
            jax.ShapeDtypeStruct((N * hw_tiles, Cout_p, 1), jnp.float32),
        ),
        grid=(N, hw_tiles),
        in_specs=[
            pl.BlockSpec((1, K_pad, THW), lambda n, j: (n, 0, j)),
            pl.BlockSpec((Cout_p, K_pad), lambda n, j: (0, 0)),   # resident
            pl.BlockSpec((Cout_p, 1), lambda n, j: (0, 0)),       # resident
        ],
        out_specs=(
            pl.BlockSpec((1, Cout_p, THW), lambda n, j: (n, 0, j)),
            pl.BlockSpec((1, Cout_p, 1), lambda n, j: (n * hw_tiles + j, 0, 0)),
            pl.BlockSpec((1, Cout_p, 1), lambda n, j: (n * hw_tiles + j, 0, 0)),
        ),
        compiler_params=pltpu.CompilerParams(
            dimension_semantics=("parallel", "parallel"),
            vmem_limit_bytes=vmem_limit),
    )(patches, wmat, bias)

    # ---- BatchNorm batch statistics (training-mode) from the tiny partials ----
    if batchnorm:
        count = float(N * HoWo)
        zsum = jnp.sum(psum, axis=0)                   # (Cout_p, 1), bias-centred
        zsq = jnp.sum(psq, axis=0)
        mean_z = zsum / count
        var = jnp.maximum(zsq / count - mean_z * mean_z, 0.0)   # biased, clamped
        inv = lax.rsqrt(var + BN_EPS)
        gamma_c = jnp.pad(gamma.astype(jnp.float32).reshape(Cout, 1),
                          ((0, Cout_p - Cout), (0, 0)))
        beta_c = jnp.pad(beta.astype(jnp.float32).reshape(Cout, 1),
                         ((0, Cout_p - Cout), (0, 0)))
        scale = gamma_c * inv
        shift = beta_c - (mean_z + bias) * scale
        # TODO(synk): PyTorch BatchNorm2d(training) also updates running_mean /
        # running_var buffers; expose (mean_z + bias, unbiased var) if needed.
    else:
        scale = jnp.ones((Cout_p, 1), jnp.float32)
        shift = jnp.zeros((Cout_p, 1), jnp.float32)

    # ---- fused normalize + LeakyReLU (mem-bound elementwise pass) ----
    out_t = pl.pallas_call(
        functools.partial(_bn_act_kernel, batchnorm=batchnorm,
                          activation=activation),
        out_shape=jax.ShapeDtypeStruct((N, Cout_p, HoWo_pad), jnp.float32),
        grid=(N, hw_tiles),
        in_specs=[
            pl.BlockSpec((1, Cout_p, THW), lambda n, j: (n, 0, j)),
            pl.BlockSpec((Cout_p, 1), lambda n, j: (0, 0)),
            pl.BlockSpec((Cout_p, 1), lambda n, j: (0, 0)),
        ],
        out_specs=pl.BlockSpec((1, Cout_p, THW), lambda n, j: (n, 0, j)),
        compiler_params=pltpu.CompilerParams(
            dimension_semantics=("parallel", "parallel"),
            vmem_limit_bytes=32 * 1024 * 1024),
    )(conv_t, scale, shift)

    # channels-major output -> NCHW is just a slice + reshape (free when the
    # channel / spatial dims are already padded-size aligned).
    out = out_t[:, :Cout, :HoWo].reshape(N, Cout, Ho, Wo)
    return out


# ---------------- pure-JAX reference for verification ----------------

def _reference(x, w, b, gamma, beta, *, activation=True, batchnorm=True):
    xp = jnp.pad(x, ((0, 0), (0, 0), (1, 1), (1, 1)), mode="reflect")
    # same numerics as the kernel: bf16 conv inputs, f32 accumulation
    y = lax.conv_general_dilated(
        xp.astype(jnp.bfloat16), w.astype(jnp.bfloat16),
        window_strides=(2, 2), padding="VALID",
        dimension_numbers=("NCHW", "OIHW", "NCHW"),
        preferred_element_type=jnp.float32) + b.reshape(1, -1, 1, 1).astype(jnp.float32)
    # the Pallas kernel stores its conv intermediate in bf16; mirror the rounding
    y = y.astype(jnp.bfloat16).astype(jnp.float32)
    if batchnorm:
        mu = y.mean(axis=(0, 2, 3), keepdims=True)
        va = y.var(axis=(0, 2, 3), keepdims=True)     # biased, training mode
        y = (y - mu) * lax.rsqrt(va + BN_EPS)
        y = y * gamma.reshape(1, -1, 1, 1) + beta.reshape(1, -1, 1, 1)
    if activation:
        y = jnp.where(y > 0, y, LEAKY_SLOPE * y)
    return y


if __name__ == "__main__":
    key = jax.random.PRNGKey(0)
    k_x, k_w, k_b, k_g, k_be = jax.random.split(key, 5)

    in_channels, out_channels = 4, 8
    N, H, W = 2, 16, 16

    x = jax.random.normal(k_x, (N, in_channels, H, W), dtype=jnp.float32)
    w = 0.1 * jax.random.normal(k_w, (out_channels, in_channels, 4, 4),
                                dtype=jnp.float32)
    b = 0.1 * jax.random.normal(k_b, (out_channels,), dtype=jnp.float32)
    gamma = 1.0 + 0.1 * jax.random.normal(k_g, (out_channels,), dtype=jnp.float32)
    beta = 0.1 * jax.random.normal(k_be, (out_channels,), dtype=jnp.float32)

    out = downsample_conv(x, w, b, gamma, beta,
                          activation=True, batchnorm=True)
    out = jax.block_until_ready(out)

    ref = _reference(x, w, b, gamma, beta, activation=True, batchnorm=True)
    assert out.shape == (N, out_channels, H // 2, W // 2), out.shape
    max_err = float(jnp.max(jnp.abs(out - ref)))
    # bf16 conv inputs and a bf16 conv intermediate (both mirrored in the
    # reference); residual mismatch is matmul-order / 1-ulp bf16 rounding.
    assert max_err < 2e-2, max_err

    print("KERNEL_OK")
</pallas_src>

<mosaic_0001>
module attributes {stable_mosaic.version = 11 : i64} {
  func.func @_conv_stats_kernel(%arg0: i32, %arg1: i32, %arg2: memref<1x128x64xbf16, #tpu.memory_space<vmem>>, %arg3: memref<128x128xbf16, #tpu.memory_space<vmem>>, %arg4: memref<128x1xf32, #tpu.memory_space<vmem>>, %arg5: memref<1x128x64xbf16, #tpu.memory_space<vmem>>, %arg6: memref<1x128x1xf32, #tpu.memory_space<vmem>>, %arg7: memref<1x128x1xf32, #tpu.memory_space<vmem>>) attributes {dimension_semantics = [#tpu.dimension_semantics<parallel>, #tpu.dimension_semantics<parallel>], iteration_bounds = array<i64: 2, 1>, scalar_prefetch = 0 : i64, scratch_operands = 0 : i64, tpu.core_type = #tpu.core_type<tc>, window_params = [{transform_indices = @transform_0, window_bounds = array<i64: 1, 128, 64>}, {pipeline_mode = #tpu.pipeline_mode<synchronous>, transform_indices = @transform_1, window_bounds = array<i64: 128, 128>}, {pipeline_mode = #tpu.pipeline_mode<synchronous>, transform_indices = @transform_2, window_bounds = array<i64: 128, 1>}, {transform_indices = @transform_3, window_bounds = array<i64: 1, 128, 64>}, {transform_indices = @transform_4, window_bounds = array<i64: 1, 128, 1>}, {transform_indices = @transform_5, window_bounds = array<i64: 1, 128, 1>}]} {
    %c0 = arith.constant 0 : index
    %c0_0 = arith.constant 0 : index
    %0 = vector.load %arg3[%c0, %c0_0] : memref<128x128xbf16, #tpu.memory_space<vmem>>, vector<128x128xbf16>
    %c0_1 = arith.constant 0 : index
    %c0_2 = arith.constant 0 : index
    %c0_3 = arith.constant 0 : index
    %1 = vector.load %arg2[%c0_1, %c0_2, %c0_3] : memref<1x128x64xbf16, #tpu.memory_space<vmem>>, vector<1x128x64xbf16>
    %2 = vector.shape_cast %1 : vector<1x128x64xbf16> to vector<128x64xbf16>
    %cst = arith.constant dense<0.000000e+00> : vector<128x64xf32>
    %3 = tpu.matmul %0, %2, %cst {dimension_numbers = #tpu.dot_dimension_numbers<[1], [0], [0], [1], [0, 0, 1, 1], [], []>} : vector<128x128xbf16>, vector<128x64xbf16>, vector<128x64xf32> -> vector<128x64xf32>
    %c0_4 = arith.constant 0 : index
    %c0_5 = arith.constant 0 : index
    %4 = vector.load %arg4[%c0_4, %c0_5] : memref<128x1xf32, #tpu.memory_space<vmem>>, vector<128x1xf32>
    %5 = vector.broadcast %4 : vector<128x1xf32> to vector<128x64xf32>
    %6 = arith.addf %3, %5 : vector<128x64xf32>
    %7 = arith.truncf %6 : vector<128x64xf32> to vector<128x64xbf16>
    %c0_6 = arith.constant 0 : index
    %c0_7 = arith.constant 0 : index
    %c0_8 = arith.constant 0 : index
    %8 = vector.load %arg5[%c0_6, %c0_7, %c0_8] : memref<1x128x64xbf16, #tpu.memory_space<vmem>>, vector<1x128x64xbf16>
    %9 = vector.shape_cast %8 : vector<1x128x64xbf16> to vector<128x64xbf16>
    %10 = vector.shape_cast %7 : vector<128x64xbf16> to vector<1x128x64xbf16>
    tpu.vector_store %arg5[%c0_6, %c0_7, %c0_8], %10 {strides = array<i32>} : memref<1x128x64xbf16, #tpu.memory_space<vmem>>, vector<1x128x64xbf16>,
    %cst_9 = arith.constant dense<0.000000e+00> : vector<128xf32>
    %11 = vector.multi_reduction <add>, %3, %cst_9 [1] : vector<128x64xf32> to vector<128xf32>
    %12 = vector.shape_cast %11 : vector<128xf32> to vector<128x1xf32>
    %c0_10 = arith.constant 0 : index
    %c0_11 = arith.constant 0 : index
    %c0_12 = arith.constant 0 : index
    %13 = vector.load %arg6[%c0_10, %c0_11, %c0_12] : memref<1x128x1xf32, #tpu.memory_space<vmem>>, vector<1x128x1xf32>
    %14 = vector.shape_cast %13 : vector<1x128x1xf32> to vector<128x1xf32>
    %15 = vector.shape_cast %12 : vector<128x1xf32> to vector<1x128x1xf32>
    tpu.vector_store %arg6[%c0_10, %c0_11, %c0_12], %15 {strides = array<i32>} : memref<1x128x1xf32, #tpu.memory_space<vmem>>, vector<1x128x1xf32>,
    %16 = arith.mulf %3, %3 : vector<128x64xf32>
    %cst_13 = arith.constant dense<0.000000e+00> : vector<128xf32>
    %17 = vector.multi_reduction <add>, %16, %cst_13 [1] : vector<128x64xf32> to vector<128xf32>
    %18 = vector.shape_cast %17 : vector<128xf32> to vector<128x1xf32>
    %c0_14 = arith.constant 0 : index
    %c0_15 = arith.constant 0 : index
    %c0_16 = arith.constant 0 : index
    %19 = vector.load %arg7[%c0_14, %c0_15, %c0_16] : memref<1x128x1xf32, #tpu.memory_space<vmem>>, vector<1x128x1xf32>
    %20 = vector.shape_cast %19 : vector<1x128x1xf32> to vector<128x1xf32>
    %21 = vector.shape_cast %18 : vector<128x1xf32> to vector<1x128x1xf32>
    tpu.vector_store %arg7[%c0_14, %c0_15, %c0_16], %21 {strides = array<i32>} : memref<1x128x1xf32, #tpu.memory_space<vmem>>, vector<1x128x1xf32>,
    return
  }
  func.func @transform_0(%arg0: i32, %arg1: i32) -> (i32, i32, i32) {
    %c0_i32 = arith.constant 0 : i32
    %c0_i32_0 = arith.constant 0 : i32
    return %arg0, %c0_i32, %arg1 : i32, i32, i32
  }
  func.func @transform_1(%arg0: i32, %arg1: i32) -> (i32, i32) {
    %c0_i32 = arith.constant 0 : i32
    %c0_i32_0 = arith.constant 0 : i32
    %c0_i32_1 = arith.constant 0 : i32
    return %c0_i32, %c0_i32_0 : i32, i32
  }
  func.func @transform_2(%arg0: i32, %arg1: i32) -> (i32, i32) {
    %c0_i32 = arith.constant 0 : i32
    %c0_i32_0 = arith.constant 0 : i32
    %c0_i32_1 = arith.constant 0 : i32
    return %c0_i32, %c0_i32_0 : i32, i32
  }
  func.func @transform_3(%arg0: i32, %arg1: i32) -> (i32, i32, i32) {
    %c0_i32 = arith.constant 0 : i32
    %c0_i32_0 = arith.constant 0 : i32
    return %arg0, %c0_i32, %arg1 : i32, i32, i32
  }
  func.func @transform_4(%arg0: i32, %arg1: i32) -> (i32, i32, i32) {
    %c1_i32 = arith.constant 1 : i32
    %0 = arith.muli %arg0, %c1_i32 : i32
    %1 = arith.addi %0, %arg1 : i32
    %c0_i32 = arith.constant 0 : i32
    %c0_i32_0 = arith.constant 0 : i32
    %c0_i32_1 = arith.constant 0 : i32
    return %1, %c0_i32, %c0_i32_0 : i32, i32, i32
  }
  func.func @transform_5(%arg0: i32, %arg1: i32) -> (i32, i32, i32) {
    %c1_i32 = arith.constant 1 : i32
    %0 = arith.muli %arg0, %c1_i32 : i32
    %1 = arith.addi %0, %arg1 : i32
    %c0_i32 = arith.constant 0 : i32
    %c0_i32_0 = arith.constant 0 : i32
    %c0_i32_1 = arith.constant 0 : i32
    return %1, %c0_i32, %c0_i32_0 : i32, i32, i32
  }
}

</mosaic_0001>

<bundles_post_ra>
// kernel: tpu_custom_call.1
= control target key start
LH: loop header
LB: loop body
LE: loop exit
PB: predicated region body
PF: predicated region fallthrough
CT: control target
= control target key end

     0   :  { %s1241_s18 = smov 0   ;;  %s1243_s19 = smov 0   ;;  %s1585_s0 = inlined_call_operand.vmem [shape: bf16[2,128,64], index: 0, kind: input, shape index: {}]   ;;  %s1586_s1 = inlined_call_operand.vmem [shape: bf16[128,128], index: 1, kind: input, shape index: {}]   ;;  %s1587_s2 = inlined_call_operand.vmem [shape: f32[128,1], index: 2, kind: input, shape index: {}]   ;;  %s1588_s3 = inlined_call_operand.vmem [shape: bf16[2,128,64], index: 3, kind: output, shape index: {0}]   ;;  %s1589_s4 = inlined_call_operand.vmem [shape: f32[2,128,1], index: 4, kind: output, shape index: {1}]   ;;  %s1590_s5 = inlined_call_operand.vmem [shape: f32[2,128,1], index: 5, kind: output, shape index: {2}]  }
   0x1   :  { %s1245_s20 = smov 0  }
   0x2 LB: > { %s28_s21 = sadd.s32 1, %s1204_s19  ;;  %p1016_p0 = scmp.ge.s32.totalorder %s1208_s20, 1  ;;  %s1208_s20 = sphi %s1245_s20, %s16_s20   ;;  %s1204_s19 = sphi %s1243_s19, %s1592_s19   ;;  %s1200_s18 = sphi %s1241_s18, %s1591_s18  }
   0x3   : > { %p30_p1 = scmp.ge.s32.totalorder %s28_s21, 2  ;;  %p215_p2 = scmp.lt.s32.totalorder %s1208_s20, 3 }
   0x5   : > { %s1594_s21 = smov (%p30_p1, %s28_s21), 0  ;;  %p216_p3 = pnand %p1016_p0, %p215_p2 }
   0x6   : > { %p261_p4 = scmp.lt.s32.totalorder (!%p216_p3), %s1200_s18, 1 }
   0x7   : > { %219 = sbr.rel (%p216_p3) target bundleno = 445 (0x1bd), region = 32 }
   0xc   : > { %v1178_v0 = vld [vmem:[%s1586_s1] sm:$0xff]   ;;  %s1596_s18 = smov (!%p261_p4, %s1200_s18), 1  ;;  %v1210_v2 = vmov 0   ;;  %v519_v7 = vld [vmem:[%s1587_s2 + $0x10] sm:$0xff]  ;;  %v520_v10 = vld [vmem:[%s1587_s2 + $0x18] sm:$0xff]  ;;  %vm710_vm0 = vcmask 523264  }
   0xd   : > { %v1179_v1 = vld [vmem:[%s1586_s1 + $0x20] sm:$0xff]   ;;  %1111 = vmatprep.mubr.bf16.mxu0 %v1178_v0  ;;  %1169 = vset.pattern.permute.xlu1 %v1210_v2  ;;  %s1059_s26 = sshll.u32 %s1596_s18, 6  ;;  %v518_v11 = vld [vmem:[%s1587_s2 + $0x8] sm:$0xff]  ;;  %v524_v16 = vld [vmem:[%s1587_s2 + $0x38] sm:$0xff]  ;;  %vm693_vm1 = vcmask 519168   ;;  %vm759_vm2 = vcmask 7168  }
   0xe   : > { %1119 = vmatprep.mubr.bf16.mxu1 %v1179_v1  ;;  %1168 = vset.pattern.permute.xlu0 %v1210_v2  ;;  %s1273_s29 = scalar_lea.vmem %s1585_s0, %s1059_s26  ;;  %v517_v8 = vld [vmem:[%s1587_s2] sm:$0xff]  ;;  %v522_v13 = vld [vmem:[%s1587_s2 + $0x28] sm:$0xff]  ;;  %v523_v17 = vld [vmem:[%s1587_s2 + $0x30] sm:$0xff]  ;;  %s1362_s11 = scalar_lea.vmem %s1588_s3, %s1059_s26 }
   0xf   : > { %v1170_v3 = vld [vmem:[%s1273_s29 + $0x38] sm:$0xff]   ;;  %v1171_v4 = vld [vmem:[%s1273_s29 + $0x30] sm:$0xff]   ;;  %v1172_v5 = vld [vmem:[%s1273_s29 + $0x28] sm:$0xff]   ;;  %545 = vperm.xlu1 %1169, %v519_v7   ;;  %535 = vperm.xlu0 %1168, %v517_v8   ;;  %s1061_s26 = sshll.u32 %s1596_s18, 7 }
  0x10   : > { %1095 = vmatprep.subr.bf16.mxu0 %v1170_v3  ;;  %1127 = vmatprep.subr.bf16.mxu1 %v1170_v3  ;;  %v1173_v6 = vld [vmem:[%s1273_s29 + $0x20] sm:$0xff]   ;;  %v1174_v9 = vld [vmem:[%s1273_s29 + $0x18] sm:$0xff]   ;;  %v1175_v12 = vld [vmem:[%s1273_s29 + $0x10] sm:$0xff]   ;;  %s1505_s14 = scalar_lea.vmem %s1589_s4, %s1061_s26  ;;  %s1518_s16 = scalar_lea.vmem %s1590_s5, %s1061_s26 }
  0x11   : > { %1096 = vmatpush3.bf16.msra.mxu0 %v1170_v3  ;;  %1135 = vmatpush3.bf16.msra.mxu1 %v1170_v3  ;;  %v521_v14 = vld [vmem:[%s1587_s2 + $0x20] sm:$0xff]  ;;  %v1176_v15 = vld [vmem:[%s1273_s29 + $0x8] sm:$0xff]   ;;  %v528_v23 = vld [vmem:[%s1587_s2 + $0x58] sm:$0xff] }
  0x12   : > { %1097 = vmatprep.subr.bf16.mxu0 %v1171_v4  ;;  %1128 = vmatprep.subr.bf16.mxu1 %v1171_v4  ;;  %v1177_v18 = vld [vmem:[%s1273_s29] sm:$0xff]   ;;  %v526_v19 = vld [vmem:[%s1587_s2 + $0x48] sm:$0xff]  ;;  %v527_v24 = vld [vmem:[%s1587_s2 + $0x50] sm:$0xff] }
  0x13   : > { %550 = vperm.xlu1 %1169, %v520_v10   ;;  %540 = vperm.xlu0 %1168, %v518_v11   ;;  %v525_v20 = vld [vmem:[%s1587_s2 + $0x40] sm:$0xff]  ;;  %v1180_v21 = vld [vmem:[%s1586_s1 + $0x8] sm:$0xff]   ;;  %v1182_v25 = vld [vmem:[%s1586_s1 + $0x10] sm:$0xff]  }
  0x14   : > { %v1181_v22 = vld [vmem:[%s1586_s1 + $0x28] sm:$0xff]   ;;  %v1184_v26 = vld [vmem:[%s1586_s1 + $0x30] sm:$0xff]   ;;  %v529_v28 = vld [vmem:[%s1587_s2 + $0x60] sm:$0xff] }
  0x15   : > { %1098 = vmatpush3.bf16.msra.mxu0 %v1171_v4  ;;  %1136 = vmatpush3.bf16.msra.mxu1 %v1171_v4  ;;  %v530_v27 = vld [vmem:[%s1587_s2 + $0x68] sm:$0xff]  ;;  %v1183_v29 = vld [vmem:[%s1586_s1 + $0x18] sm:$0xff]   ;;  %v531_v32 = vld [vmem:[%s1587_s2 + $0x70] sm:$0xff] }
  0x16   : > { %1099 = vmatprep.subr.bf16.mxu0 %v1172_v5  ;;  %1129 = vmatprep.subr.bf16.mxu1 %v1172_v5  ;;  %v1185_v30 = vld [vmem:[%s1586_s1 + $0x38] sm:$0xff]  }
  0x17   : > { %560 = vperm.xlu1 %1169, %v522_v13   ;;  %555 = vperm.xlu0 %1168, %v521_v14   ;;  %v532_v31 = vld [vmem:[%s1587_s2 + $0x78] sm:$0xff] }
  0x19   : > { %1100 = vmatpush3.bf16.msra.mxu0 %v1172_v5  ;;  %1137 = vmatpush3.bf16.msra.mxu1 %v1172_v5 }
  0x1a   : > { %1101 = vmatprep.subr.bf16.mxu0 %v1173_v6  ;;  %1130 = vmatprep.subr.bf16.mxu1 %v1173_v6 }
  0x1b   : > { %570 = vperm.xlu1 %1169, %v524_v16   ;;  %565 = vperm.xlu0 %1168, %v523_v17  }
  0x1d   : > { %1102 = vmatpush3.bf16.msra.mxu0 %v1173_v6  ;;  %1138 = vmatpush3.bf16.msra.mxu1 %v1173_v6 }
  0x1e   : > { %1103 = vmatprep.subr.bf16.mxu0 %v1174_v9  ;;  %1131 = vmatprep.subr.bf16.mxu1 %v1174_v9 }
  0x1f   : > { %580 = vperm.xlu1 %1169, %v526_v19   ;;  %575 = vperm.xlu0 %1168, %v525_v20  }
  0x21   : > { %1104 = vmatpush3.bf16.msra.mxu0 %v1174_v9  ;;  %1139 = vmatpush3.bf16.msra.mxu1 %v1174_v9 }
  0x22   : > { %1105 = vmatprep.subr.bf16.mxu0 %v1175_v12  ;;  %1132 = vmatprep.subr.bf16.mxu1 %v1175_v12 }
  0x23   : > { %590 = vperm.xlu1 %1169, %v528_v23   ;;  %585 = vperm.xlu0 %1168, %v527_v24  }
  0x25   : > { %1106 = vmatpush3.bf16.msra.mxu0 %v1175_v12  ;;  %1140 = vmatpush3.bf16.msra.mxu1 %v1175_v12 }
  0x26   : > { %1107 = vmatprep.subr.bf16.mxu0 %v1176_v15  ;;  %1133 = vmatprep.subr.bf16.mxu1 %v1176_v15 }
  0x27   : > { %600 = vperm.xlu1 %1169, %v530_v27   ;;  %595 = vperm.xlu0 %1168, %v529_v28  }
  0x29   : > { %1108 = vmatpush3.bf16.msra.mxu0 %v1176_v15  ;;  %1141 = vmatpush3.bf16.msra.mxu1 %v1176_v15 }
  0x2a   : > { %1109 = vmatprep.subr.bf16.mxu0 %v1177_v18  ;;  %1134 = vmatprep.subr.bf16.mxu1 %v1177_v18 }
  0x2b   : > { %610 = vperm.xlu1 %1169, %v532_v31   ;;  %605 = vperm.xlu0 %1168, %v531_v32  }
  0x2d   : > { %1110 = vmatpush3.bf16.msra.mxu0 %v1177_v18  ;;  %1142 = vmatpush3.bf16.msra.mxu1 %v1177_v18 }
  0x30   : > { %1112 = vmatmul.mubr.bf16.vlgmr.msra.gmra.mxu0 %v1180_v21  ;;  %1120 = vmatmul.mubr.bf16.vlgmr.msra.gmra.mxu1 %v1181_v22 }
  0x31   : > { %1115 = vmatprep.mubr.bf16.mxu0 %v1182_v25  ;;  %1123 = vmatprep.mubr.bf16.mxu1 %v1184_v26 }
  0x38   : > { %1116 = vmatmul.mubr.bf16.gmra.mxu0 %v1183_v29  ;;  %1124 = vmatmul.mubr.bf16.gmra.mxu1 %v1185_v30 }
  0x8a   : > { %v536_v33 = vpop.permute.xlu0 %535  ;;  %v546_v34 = vpop.permute.xlu1 %545 }
  0x8e   : > { %v541_v35 = vpop.permute.xlu0 %540  ;;  %v551_v36 = vpop.permute.xlu1 %550 }
  0x92   : > { %v1349_v37 = vpop.permute.xlu0 %555  ;;  %v1351_v38 = vpop.permute.xlu1 %560 }
  0x96   : > { %v566_v39 = vpop.permute.xlu0 %565  ;;  %v1353_v40 = vpop.permute.xlu1 %570 }
  0x9a   : > { %v576_v41 = vpop.permute.xlu0 %575  ;;  %v581_v42 = vpop.permute.xlu1 %580 }
  0x9e   : > { %v586_v43 = vpop.permute.xlu0 %585  ;;  %v591_v49 = vpop.permute.xlu1 %590 }
  0xa2   : > { %v596_v57 = vpop.permute.xlu0 %595  ;;  %v601_v3 = vpop.permute.xlu1 %600 }
  0xa6   : > { %v606_v17 = vpop.permute.xlu0 %605  ;;  %v611_v23 = vpop.permute.xlu1 %610 }
  0xf0   : > { %v1113_v44 = vpop.f32.mrf.mxu0  ;;  %v1121_v45 = vpop.f32.mrf.mxu1 }
  0xf1   : > { %v615_v46 = vadd.f32 %v1113_v44, %v546_v34  ;;  %v741_v47 = vsel %vm710_vm0, %v1121_v45, 0.0  ;;  %v717_v48 = vsel %vm710_vm0, %v1113_v44, 0.0  ;;  %v623_v50 = vadd.f32 %v1121_v45, %v586_v43 }
  0xf2   : > { %742 = vadd.xlane.f32.xlu1 %v741_v47  ;;  %718 = vadd.xlane.f32.xlu0 %v717_v48  ;;  %v454_v51 = vpop.f32.mrf.mxu0  ;;  %v1364_v52 = vpop.f32.mrf.mxu1  ;;  %v778_v62 = vmul.f32 %v1113_v44, %v1113_v44  ;;  %v786_v10 = vmul.f32 %v1121_v45, %v1121_v45 }
  0xf3   : > { %v1065_v53 = vpack.c.bf16 %v615_v46, %v615_v46  ;;  %v613_v54 = vadd.f32 %v536_v33, %v454_v51  ;;  %v621_v55 = vadd.f32 %v576_v41, %v1364_v52  ;;  %v735_v56 = vsel %vm710_vm0, %v1364_v52, 0.0 }
  0xf4   : > { %v1369_v58 = vpop.f32.mrf.mxu0  ;;  %v1371_v59 = vpop.f32.mrf.mxu1  ;;  %v711_v60 = vsel %vm710_vm0, %v454_v51, 0.0  ;;  %v1073_v61 = vpack.c.bf16 %v623_v50, %v623_v50  ;;  %v798_v15 = vsel %vm710_vm0, %v778_v62, 0.0  ;;  %v822_v24 = vsel %vm710_vm0, %v786_v10, 0.0 }
  0xf5   : > { %696 = vst.msk [vmem:[%s1362_s11 + $0x8] sm:$0xf] %vm693_vm1, %v1065_v53  ;;  %v1063_v63 = vpack.c.bf16 %v613_v54, %v613_v54  ;;  %v616_v0 = vadd.f32 %v1369_v58, %v551_v36  ;;  %v1071_v1 = vpack.c.bf16 %v621_v55, %v621_v55  ;;  %v624_v2 = vadd.f32 %v1371_v59, %v591_v49 }
  0xf6   : > { %736 = vadd.xlane.f32.xlu1 %v735_v56  ;;  %712 = vadd.xlane.f32.xlu0 %v711_v60  ;;  %v1378_v4 = vpop.f32.mrf.mxu0  ;;  %704 = vst.msk [vmem:[%s1362_s11 + $0x28] sm:$0xf] %vm693_vm1, %v1073_v61  ;;  %v1382_v5 = vpop.f32.mrf.mxu1  ;;  %v720_v16 = vsel %vm710_vm0, %v1369_v58, 0.0  ;;  %v776_v25 = vmul.f32 %v454_v51, %v454_v51  ;;  %v744_v30 = vsel %vm710_vm0, %v1371_v59, 0.0  ;;  %v784_v43 = vmul.f32 %v1364_v52, %v1364_v52 }
  0xf7   : > { %694 = vst.msk [vmem:[%s1362_s11] sm:$0xf] %vm693_vm1, %v1063_v63  ;;  %v1066_v6 = vpack.c.bf16 %v616_v0, %v616_v0  ;;  %702 = vst.msk [vmem:[%s1362_s11 + $0x20] sm:$0xf] %vm693_vm1, %v1071_v1  ;;  %v614_v7 = vadd.f32 %v541_v35, %v1378_v4  ;;  %v1074_v8 = vpack.c.bf16 %v624_v2, %v624_v2  ;;  %v738_v45 = vsel %vm710_vm0, %v1382_v5, 0.0 }
  0xf8   : > { %v622_v9 = vadd.f32 %v581_v42, %v1382_v5  ;;  %v1390_v11 = vpop.f32.mrf.mxu0  ;;  %v1392_v12 = vpop.f32.mrf.mxu1  ;;  %v792_v42 = vsel %vm710_vm0, %v776_v25, 0.0  ;;  %v779_v46 = vmul.f32 %v1369_v58, %v1369_v58  ;;  %v816_v48 = vsel %vm710_vm0, %v784_v43, 0.0 }
  0xf9   : > { %697 = vst.msk [vmem:[%s1362_s11 + $0xc] sm:$0xf] %vm693_vm1, %v1066_v6  ;;  %v1064_v13 = vpack.c.bf16 %v614_v7, %v614_v7  ;;  %705 = vst.msk [vmem:[%s1362_s11 + $0x2c] sm:$0xf] %vm693_vm1, %v1074_v8  ;;  %v619_v18 = vadd.f32 %v1390_v11, %v566_v39  ;;  %v627_v29 = vadd.f32 %v1392_v12, %v606_v17  ;;  %v714_v52 = vsel %vm710_vm0, %v1378_v4, 0.0 }
  0xfa   : > { %v1072_v14 = vpack.c.bf16 %v622_v9, %v622_v9  ;;  %799 = vadd.xlane.f32.xlu1 %v798_v15  ;;  %721 = vadd.xlane.f32.xlu0 %v720_v16  ;;  %v1402_v19 = vpop.f32.mrf.mxu0  ;;  %v1404_v20 = vpop.f32.mrf.mxu1  ;;  %v801_v49 = vsel %vm710_vm0, %v779_v46, 0.0  ;;  %v787_v50 = vmul.f32 %v1371_v59, %v1371_v59  ;;  %v777_v53 = vmul.f32 %v1378_v4, %v1378_v4 }
  0xfb   : > { %695 = vst.msk [vmem:[%s1362_s11 + $0x4] sm:$0xf] %vm693_vm1, %v1064_v13  ;;  %v617_v21 = vadd.f32 %v1349_v37, %v1402_v19  ;;  %v625_v22 = vadd.f32 %v596_v57, %v1404_v20  ;;  %v1069_v26 = vpack.c.bf16 %v619_v18, %v619_v18  ;;  %v1077_v36 = vpack.c.bf16 %v627_v29, %v627_v29 }
  0xfc   : > { %703 = vst.msk [vmem:[%s1362_s11 + $0x24] sm:$0xf] %vm693_vm1, %v1072_v14  ;;  %v1414_v27 = vpop.f32.mrf.mxu0  ;;  %v1416_v28 = vpop.f32.mrf.mxu1  ;;  %v825_v51 = vsel %vm710_vm0, %v787_v50, 0.0  ;;  %v729_v54 = vsel %vm710_vm0, %v1390_v11, 0.0  ;;  %v795_v55 = vsel %vm710_vm0, %v777_v53, 0.0  ;;  %v785_v56 = vmul.f32 %v1382_v5, %v1382_v5 }
  0xfd   : > { %v1067_v31 = vpack.c.bf16 %v617_v21, %v617_v21  ;;  %v620_v32 = vadd.f32 %v1414_v27, %v1353_v40  ;;  %v1075_v33 = vpack.c.bf16 %v625_v22, %v625_v22  ;;  %700 = vst.msk [vmem:[%s1362_s11 + $0x18] sm:$0xf] %vm693_vm1, %v1069_v26  ;;  %v628_v35 = vadd.f32 %v1416_v28, %v611_v23 }
  0xfe   : > { %823 = vadd.xlane.f32.xlu1 %v822_v24  ;;  %745 = vadd.xlane.f32.xlu0 %v744_v30  ;;  %v473_v34 = vpop.f32.mrf.mxu0  ;;  %v1426_v37 = vpop.f32.mrf.mxu1  ;;  %708 = vst.msk [vmem:[%s1362_s11 + $0x38] sm:$0xf] %vm693_vm1, %v1077_v36  ;;  %v753_v57 = vsel %vm710_vm0, %v1392_v12, 0.0  ;;  %v819_v58 = vsel %vm710_vm0, %v785_v56, 0.0  ;;  %v723_v59 = vsel %vm710_vm0, %v1402_v19, 0.0  ;;  %v732_v60 = vsel %vm710_vm0, %v1414_v27, 0.0 }
  0xff   : > { %698 = vst.msk [vmem:[%s1362_s11 + $0x10] sm:$0xf] %vm693_vm1, %v1067_v31  ;;  %v1070_v39 = vpack.c.bf16 %v620_v32, %v620_v32  ;;  %v618_v40 = vadd.f32 %v1351_v38, %v473_v34  ;;  %706 = vst.msk [vmem:[%s1362_s11 + $0x30] sm:$0xf] %vm693_vm1, %v1075_v33  ;;  %v626_v41 = vadd.f32 %v601_v3, %v1426_v37  ;;  %v747_v61 = vsel %vm710_vm0, %v1404_v20, 0.0 }
 0x100   : > { %v1078_v44 = vpack.c.bf16 %v628_v35, %v628_v35  ;;  %v756_v62 = vsel %vm710_vm0, %v1416_v28, 0.0  ;;  %v782_v63 = vmul.f32 %v1390_v11, %v1390_v11  ;;  %v726_v1 = vsel %vm710_vm0, %v473_v34, 0.0 }
 0x101   : > { %701 = vst.msk [vmem:[%s1362_s11 + $0x1c] sm:$0xf] %vm693_vm1, %v1070_v39  ;;  %v1068_v38 = vpack.c.bf16 %v618_v40, %v618_v40  ;;  %v1076_v47 = vpack.c.bf16 %v626_v41, %v626_v41  ;;  %v780_v2 = vmul.f32 %v1402_v19, %v1402_v19  ;;  %v750_v4 = vsel %vm710_vm0, %v1426_v37, 0.0 }
 0x102   : > { %793 = vadd.xlane.f32.xlu1 %v792_v42  ;;  %739 = vadd.xlane.f32.xlu0 %v738_v45  ;;  %709 = vst.msk [vmem:[%s1362_s11 + $0x3c] sm:$0xf] %vm693_vm1, %v1078_v44  ;;  %v810_v0 = vsel %vm710_vm0, %v782_v63, 0.0  ;;  %v788_v5 = vmul.f32 %v1404_v20, %v1404_v20  ;;  %v783_v6 = vmul.f32 %v1414_v27, %v1414_v27 }
 0x103   : > { %699 = vst.msk [vmem:[%s1362_s11 + $0x14] sm:$0xf] %vm693_vm1, %v1068_v38  ;;  %707 = vst.msk [vmem:[%s1362_s11 + $0x34] sm:$0xf] %vm693_vm1, %v1076_v47  ;;  %v804_v3 = vsel %vm710_vm0, %v780_v2, 0.0  ;;  %v781_v7 = vmul.f32 %v473_v34, %v473_v34  ;;  %v790_v10 = vmul.f32 %v1392_v12, %v1392_v12  ;;  %v789_v11 = vmul.f32 %v1426_v37, %v1426_v37 }
 0x104   : > { %v828_v8 = vsel %vm710_vm0, %v788_v5, 0.0  ;;  %v813_v9 = vsel %vm710_vm0, %v783_v6, 0.0  ;;  %v791_v16 = vmul.f32 %v1416_v28, %v1416_v28 }
 0x105   : > { %v834_v13 = vsel %vm710_vm0, %v790_v10, 0.0  ;;  %v807_v14 = vsel %vm710_vm0, %v781_v7, 0.0  ;;  %v831_v15 = vsel %vm710_vm0, %v789_v11, 0.0 }
 0x106   : > { %817 = vadd.xlane.f32.xlu1 %v816_v48  ;;  %802 = vadd.xlane.f32.xlu0 %v801_v49  ;;  %v837_v17 = vsel %vm710_vm0, %v791_v16, 0.0 }
 0x10a   : > { %826 = vadd.xlane.f32.xlu0 %v825_v51  ;;  %715 = vadd.xlane.f32.xlu1 %v714_v52 }
 0x10e   : > { %796 = vadd.xlane.f32.xlu0 %v795_v55  ;;  %730 = vadd.xlane.f32.xlu1 %v729_v54 }
 0x112   : > { %820 = vadd.xlane.f32.xlu0 %v819_v58  ;;  %754 = vadd.xlane.f32.xlu1 %v753_v57 }
 0x116   : > { %724 = vadd.xlane.f32.xlu1 %v723_v59  ;;  %733 = vadd.xlane.f32.xlu0 %v732_v60 }
 0x11a   : > { %748 = vadd.xlane.f32.xlu1 %v747_v61  ;;  %757 = vadd.xlane.f32.xlu0 %v756_v62 }
 0x11e   : > { %811 = vadd.xlane.f32.xlu1 %v810_v0  ;;  %727 = vadd.xlane.f32.xlu0 %v726_v1 }
 0x122   : > { %805 = vadd.xlane.f32.xlu1 %v804_v3  ;;  %751 = vadd.xlane.f32.xlu0 %v750_v4 }
 0x126   : > { %829 = vadd.xlane.f32.xlu1 %v828_v8  ;;  %814 = vadd.xlane.f32.xlu0 %v813_v9 }
 0x12a   : > { %835 = vadd.xlane.f32.xlu1 %v834_v13  ;;  %808 = vadd.xlane.f32.xlu0 %v807_v14 }
 0x12e   : > { %832 = vadd.xlane.f32.xlu0 %v831_v15 }
 0x132   : > { %838 = vadd.xlane.f32.xlu0 %v837_v17 }
 0x17b   : > { %v743_v12 = vpop.xlane.xlu1 %742  ;;  %v719_v18 = vpop.xlane.xlu0 %718 }
 0x17c   : > { %770 = vst.msk [vmem:[%s1505_s14 + $0x50] sm:$0xff] %vm759_vm2, %v743_v12  ;;  %762 = vst.msk [vmem:[%s1505_s14 + $0x10] sm:$0xff] %vm759_vm2, %v719_v18 }
 0x17f   : > { %v737_v19 = vpop.xlane.xlu1 %736  ;;  %v713_v20 = vpop.xlane.xlu0 %712 }
 0x180   : > { %768 = vst.msk [vmem:[%s1505_s14 + $0x40] sm:$0xff] %vm759_vm2, %v737_v19  ;;  %760 = vst.msk [vmem:[%s1505_s14] sm:$0xff] %vm759_vm2, %v713_v20 }
 0x183   : > { %v800_v21 = vpop.xlane.xlu1 %799  ;;  %v722_v22 = vpop.xlane.xlu0 %721 }
 0x184   : > { %842 = vst.msk [vmem:[%s1518_s16 + $0x10] sm:$0xff] %vm759_vm2, %v800_v21  ;;  %763 = vst.msk [vmem:[%s1505_s14 + $0x18] sm:$0xff] %vm759_vm2, %v722_v22 }
 0x187   : > { %v824_v23 = vpop.xlane.xlu1 %823  ;;  %v746_v24 = vpop.xlane.xlu0 %745 }
 0x188   : > { %850 = vst.msk [vmem:[%s1518_s16 + $0x50] sm:$0xff] %vm759_vm2, %v824_v23  ;;  %771 = vst.msk [vmem:[%s1505_s14 + $0x58] sm:$0xff] %vm759_vm2, %v746_v24 }
 0x18b   : > { %v794_v25 = vpop.xlane.xlu1 %793  ;;  %v740_v26 = vpop.xlane.xlu0 %739 }
 0x18c   : > { %840 = vst.msk [vmem:[%s1518_s16] sm:$0xff] %vm759_vm2, %v794_v25  ;;  %769 = vst.msk [vmem:[%s1505_s14 + $0x48] sm:$0xff] %vm759_vm2, %v740_v26 }
 0x18f   : > { %v818_v27 = vpop.xlane.xlu1 %817  ;;  %v803_v28 = vpop.xlane.xlu0 %802 }
 0x190   : > { %848 = vst.msk [vmem:[%s1518_s16 + $0x40] sm:$0xff] %vm759_vm2, %v818_v27  ;;  %843 = vst.msk [vmem:[%s1518_s16 + $0x18] sm:$0xff] %vm759_vm2, %v803_v28 }
 0x193   : > { %v827_v29 = vpop.xlane.xlu0 %826  ;;  %v716_v30 = vpop.xlane.xlu1 %715 }
 0x194   : > { %851 = vst.msk [vmem:[%s1518_s16 + $0x58] sm:$0xff] %vm759_vm2, %v827_v29  ;;  %761 = vst.msk [vmem:[%s1505_s14 + $0x8] sm:$0xff] %vm759_vm2, %v716_v30 }
 0x197   : > { %v797_v31 = vpop.xlane.xlu0 %796  ;;  %v731_v32 = vpop.xlane.xlu1 %730 }
 0x198   : > { %841 = vst.msk [vmem:[%s1518_s16 + $0x8] sm:$0xff] %vm759_vm2, %v797_v31  ;;  %766 = vst.msk [vmem:[%s1505_s14 + $0x30] sm:$0xff] %vm759_vm2, %v731_v32 }
 0x19b   : > { %v821_v33 = vpop.xlane.xlu0 %820  ;;  %v755_v34 = vpop.xlane.xlu1 %754 }
 0x19c   : > { %849 = vst.msk [vmem:[%s1518_s16 + $0x48] sm:$0xff] %vm759_vm2, %v821_v33  ;;  %774 = vst.msk [vmem:[%s1505_s14 + $0x70] sm:$0xff] %vm759_vm2, %v755_v34 }
 0x19f   : > { %v725_v35 = vpop.xlane.xlu1 %724  ;;  %v734_v36 = vpop.xlane.xlu0 %733 }
 0x1a0   : > { %764 = vst.msk [vmem:[%s1505_s14 + $0x20] sm:$0xff] %vm759_vm2, %v725_v35  ;;  %767 = vst.msk [vmem:[%s1505_s14 + $0x38] sm:$0xff] %vm759_vm2, %v734_v36 }
 0x1a3   : > { %v749_v37 = vpop.xlane.xlu1 %748  ;;  %v758_v39 = vpop.xlane.xlu0 %757 }
 0x1a4   : > { %772 = vst.msk [vmem:[%s1505_s14 + $0x60] sm:$0xff] %vm759_vm2, %v749_v37  ;;  %775 = vst.msk [vmem:[%s1505_s14 + $0x78] sm:$0xff] %vm759_vm2, %v758_v39 }
 0x1a7   : > { %v812_v40 = vpop.xlane.xlu1 %811  ;;  %v728_v41 = vpop.xlane.xlu0 %727 }
 0x1a8   : > { %846 = vst.msk [vmem:[%s1518_s16 + $0x30] sm:$0xff] %vm759_vm2, %v812_v40  ;;  %765 = vst.msk [vmem:[%s1505_s14 + $0x28] sm:$0xff] %vm759_vm2, %v728_v41 }
 0x1ab   : > { %v806_v42 = vpop.xlane.xlu1 %805  ;;  %v752_v43 = vpop.xlane.xlu0 %751 }
 0x1ac   : > { %844 = vst.msk [vmem:[%s1518_s16 + $0x20] sm:$0xff] %vm759_vm2, %v806_v42  ;;  %773 = vst.msk [vmem:[%s1505_s14 + $0x68] sm:$0xff] %vm759_vm2, %v752_v43 }
 0x1af   : > { %v830_v44 = vpop.xlane.xlu1 %829  ;;  %v815_v45 = vpop.xlane.xlu0 %814 }
 0x1b0   : > { %852 = vst.msk [vmem:[%s1518_s16 + $0x60] sm:$0xff] %vm759_vm2, %v830_v44  ;;  %847 = vst.msk [vmem:[%s1518_s16 + $0x38] sm:$0xff] %vm759_vm2, %v815_v45 }
 0x1b3   : > { %v836_v46 = vpop.xlane.xlu1 %835  ;;  %v809_v38 = vpop.xlane.xlu0 %808 }
 0x1b4   : > { %854 = vst.msk [vmem:[%s1518_s16 + $0x70] sm:$0xff] %vm759_vm2, %v836_v46  ;;  %845 = vst.msk [vmem:[%s1518_s16 + $0x28] sm:$0xff] %vm759_vm2, %v809_v38 }
 0x1b7   : > { %v833_v47 = vpop.xlane.xlu0 %832 }
 0x1b8   : > { %853 = vst.msk [vmem:[%s1518_s16 + $0x68] sm:$0xff] %vm759_vm2, %v833_v47 }
 0x1bb   : > { %v839_v48 = vpop.xlane.xlu0 %838 }
 0x1bc   : > { %855 = vst.msk [vmem:[%s1518_s16 + $0x78] sm:$0xff] %vm759_vm2, %v839_v48 }
 0x1bd PF: > { %s16_s20 = sadd.s32 1, %s1208_s20   ;;  %s1591_s18 = smov %s1204_s19 }
 0x1be   : > { %p13_p5 = scmp.ge.s32.totalorder %s16_s20, 4   ;;  %s1592_s19 = smov %s1594_s21 }
 0x1c0   :  { %15 = sbr.rel (!%p13_p5) target bundleno = 2 (0x2), region = 86 }

</bundles_post_ra>
